<compile_context>
chip_gen: v7x
topology: tpu7x:2x2x1
jax: 0.10.0
libtpu: 0.0.40
codegen_flags: <defaults>
</compile_context>

<pallas_src>
import functools

import jax
import jax.numpy as jnp
from jax.experimental import pallas as pl
from jax.experimental.pallas import tpu as pltpu


def _ranking_loss_kernel(packed_ref, out_ref, *, image_sets, n_pred, m_lab):
    S, N, M = image_sets, n_pred, m_lab

    # Split the packed (S, N+M) input with static slices of the ref.
    pred = packed_ref[:, pl.ds(0, N)]           # (S, N) f32 scores
    lab_f = packed_ref[:, pl.ds(N, M)]          # (S, M) f32 rank labels (exact ints)
    lab_i = lab_f.astype(jnp.int32)

    # VPU gather: g[s, i] = pred[s, lab[s, i]] via iota compare + select + lane reduce.
    iota_n = jax.lax.broadcasted_iota(jnp.int32, (S, M, N), 2)
    g = jnp.sum(
        jnp.where(iota_n == lab_i[:, :, None], pred[:, None, :], 0.0),
        axis=-1)                                # (S, M): p[l_i]

    # Pairwise hinge per round.  terms[s, i, j] is symmetric with a zero
    # diagonal, so the reference's x<y double loop equals 0.5 * full sum.
    dl = lab_f[:, :, None] - lab_f[:, None, :]  # (S, M, M): l_i - l_j
    dg = g[:, :, None] - g[:, None, :]          # (S, M, M): p[l_i] - p[l_j]
    terms = jnp.maximum(-dl * dg, 0.0)

    # One fused reduction; single scalar write to SMEM.
    out_ref[0, 0] = jnp.sum(terms) * jnp.float32(0.5 / image_sets)


def ranking_loss(inputs, label):
    """inputs: (S, N) float32 scores per round; label: (S, M) integer ranks."""
    S, N = inputs.shape
    S2, M = label.shape
    assert S2 == S

    # Pack both operands into a single f32 array -> one input DMA.
    packed = jnp.concatenate(
        [inputs.astype(jnp.float32), label.astype(jnp.float32)], axis=1)  # (S, N+M)

    kernel = functools.partial(
        _ranking_loss_kernel, image_sets=S, n_pred=N, m_lab=M)

    out = pl.pallas_call(
        kernel,
        out_shape=jax.ShapeDtypeStruct((1, 1), jnp.float32),
        in_specs=[pl.BlockSpec(memory_space=pltpu.MemorySpace.VMEM)],
        out_specs=pl.BlockSpec(memory_space=pltpu.MemorySpace.SMEM),
    )(packed)

    return out.reshape(1)  # matches torch's shape-(1,) loss tensor


def _reference_loss(inputs, labels):
    """Pure-JAX replica of the PyTorch double loop (for verification)."""
    S, M = labels.shape
    total = jnp.float32(0.0)
    for r in range(S):
        pred = inputs[r]
        lab = labels[r]
        for x in range(M):
            for y in range(x + 1, M):
                r1, r2 = lab[x], lab[y]
                total = total + jnp.maximum(
                    jnp.float32(0.0),
                    -(r1 - r2).astype(jnp.float32) * (pred[r1] - pred[r2]))
    return total / S


if __name__ == "__main__":
    image_sets = 4        # rounds (S)
    mini_batch_size = 5   # items per round; labels index into the predictions

    key = jax.random.PRNGKey(0)
    k_pred, k_lab = jax.random.split(key)

    inputs = jax.random.normal(
        k_pred, (image_sets, mini_batch_size), dtype=jnp.float32)
    # Per-round rank labels: a permutation of 0..mini_batch_size-1 (valid indices).
    labels = jnp.stack([
        jax.random.permutation(jax.random.fold_in(k_lab, r), mini_batch_size)
        for r in range(image_sets)
    ]).astype(jnp.int32)

    loss = jax.block_until_ready(ranking_loss(inputs, labels))

    ref = _reference_loss(inputs, labels)
    assert loss.shape == (1,)
    assert jnp.allclose(loss[0], ref, rtol=1e-5, atol=1e-5), (loss, ref)

    print("KERNEL_OK")
</pallas_src>

<mosaic_0001>
module attributes {stable_mosaic.version = 11 : i64} {
  func.func @_ranking_loss_kernel(%arg0: memref<4x10xf32, #tpu.memory_space<vmem>>, %arg1: memref<1x1xf32, #tpu.memory_space<smem>>) attributes {dimension_semantics = [], scalar_prefetch = 0 : i64, scratch_operands = 0 : i64, tpu.core_type = #tpu.core_type<tc>} {
    %c0 = arith.constant 0 : index
    %c0_0 = arith.constant 0 : index
    %0 = vector.load %arg0[%c0, %c0_0] : memref<4x10xf32, #tpu.memory_space<vmem>>, vector<4x5xf32>
    %c0_1 = arith.constant 0 : index
    %c5 = arith.constant 5 : index
    %1 = vector.load %arg0[%c0_1, %c5] : memref<4x10xf32, #tpu.memory_space<vmem>>, vector<4x5xf32>
    %2 = arith.fptosi %1 : vector<4x5xf32> to vector<4x5xi32>
    %3 = tpu.iota {dimensions = array<i32: 2>} : vector<4x5x5xi32>
    %4 = vector.shape_cast %2 : vector<4x5xi32> to vector<4x5x1xi32>
    %5 = vector.broadcast %4 : vector<4x5x1xi32> to vector<4x5x5xi32>
    %6 = arith.cmpi eq, %3, %5 : vector<4x5x5xi32>
    %7 = vector.shape_cast %0 : vector<4x5xf32> to vector<4x1x5xf32>
    %cst = arith.constant 0.000000e+00 : f32
    %8 = vector.shape_cast %7 : vector<4x1x5xf32> to vector<4x1x5xf32>
    %9 = vector.broadcast %8 : vector<4x1x5xf32> to vector<4x5x5xf32>
    %10 = vector.broadcast %cst : f32 to vector<4x5x5xf32>
    %11 = arith.select %6, %9, %10 : vector<4x5x5xi1>, vector<4x5x5xf32>
    %cst_2 = arith.constant dense<0.000000e+00> : vector<4x5xf32>
    %12 = vector.multi_reduction <add>, %11, %cst_2 [2] : vector<4x5x5xf32> to vector<4x5xf32>
    %13 = vector.shape_cast %1 : vector<4x5xf32> to vector<4x5x1xf32>
    %14 = vector.shape_cast %1 : vector<4x5xf32> to vector<4x1x5xf32>
    %15 = vector.broadcast %13 : vector<4x5x1xf32> to vector<4x5x5xf32>
    %16 = vector.broadcast %14 : vector<4x1x5xf32> to vector<4x5x5xf32>
    %17 = arith.subf %15, %16 : vector<4x5x5xf32>
    %18 = vector.shape_cast %12 : vector<4x5xf32> to vector<4x5x1xf32>
    %19 = vector.shape_cast %12 : vector<4x5xf32> to vector<4x1x5xf32>
    %20 = vector.broadcast %18 : vector<4x5x1xf32> to vector<4x5x5xf32>
    %21 = vector.broadcast %19 : vector<4x1x5xf32> to vector<4x5x5xf32>
    %22 = arith.subf %20, %21 : vector<4x5x5xf32>
    %cst_3 = arith.constant 0.000000e+00 : f32
    %23 = vector.broadcast %cst_3 : f32 to vector<4x5x5xf32>
    %24 = arith.subf %23, %17 : vector<4x5x5xf32>
    %25 = arith.mulf %24, %22 : vector<4x5x5xf32>
    %cst_4 = arith.constant 0.000000e+00 : f32
    %26 = vector.broadcast %cst_4 : f32 to vector<4x5x5xf32>
    %27 = arith.maximumf %25, %26 : vector<4x5x5xf32>
    %28 = vector.shape_cast %27 : vector<4x5x5xf32> to vector<1x4x5x5xf32>
    %cst_5 = arith.constant dense<0.000000e+00> : vector<1xf32>
    %29 = vector.multi_reduction <add>, %28, %cst_5 [1, 2, 3] : vector<1x4x5x5xf32> to vector<1xf32>
    %30 = vector.shape_cast %29 : vector<1xf32> to vector<1x1x1x1xf32>
    %31 = vector.extract %30[0, 0, 0, 0] : f32 from vector<1x1x1x1xf32>
    %cst_6 = arith.constant 1.250000e-01 : f32
    %32 = arith.mulf %31, %cst_6 : f32
    %c0_7 = arith.constant 0 : index
    %c0_8 = arith.constant 0 : index
    %33 = memref.load %arg1[%c0_7, %c0_8] : memref<1x1xf32, #tpu.memory_space<smem>>
    memref.store %32, %arg1[%c0_7, %c0_8] : memref<1x1xf32, #tpu.memory_space<smem>>
    return
  }
}

</mosaic_0001>

<bundles_post_ra>
// kernel: tpu_custom_call.1
= control target key start
LH: loop header
LB: loop body
LE: loop exit
PB: predicated region body
PF: predicated region fallthrough
CT: control target
= control target key end

     0   :  { %6 = vsyncpa [#allocation3], 0  ;;  %s387_s0 = inlined_call_operand.hbm [shape: f32[4,10], index: 0, kind: input, shape index: {}]   ;;  %s388_s1 = inlined_call_operand.hbm [shape: f32[1,1], index: 1, kind: output, shape index: {}]  }
   0x1   :  { %7 = vsyncpa [#allocation4], 0  ;;  %s324_s6 = smov [#allocation2]   ;;  %s288_s10 = scalar_lea.hbm %s387_s0, 64 }
   0x2   :  { %s14_s7 = sshll.u32 %s324_s6, 4  ;;  %p289_p0 = scmp.ne.s32.totalorder %s387_s0, %s288_s10  ;;  %s15_s7 = int_to_ptr.vmem [resolvable:$true] %s14_s7 }
   0x3   :  { %p292_p1 = scmp.lt.u32.totalorder %s288_s10, %s387_s0 }
   0x5   :  { %p294_p2 = pnand %p292_p1, %p289_p0 }
   0x7   :  { %297 = shalt.err (!%p294_p2)
}
   0x8   :  { %s298_s15 = scalar_lea.vmem %s15_s7, 64  ;;  %p303_p4 = scmp.lt.s32.totalorder %s15_s7, %s15_s7 }
   0x9   :  { %p299_p3 = scmp.ne.s32.totalorder %s15_s7, %s298_s15  ;;  %p304_p5 = scmp.lt.s32.totalorder %s298_s15, %s298_s15 }
   0xb   :  { %p305_p6 = por %p304_p5, %p303_p4 }
   0xd   :  { %p306_p7 = pnand %p305_p6, %p299_p3 }
   0xf   :  { %309 = shalt.err (!%p306_p7)
}
  0x10   :  { %17 = dma.hbm_to_vmem [thread:$0]  %s387_s0, 64, %s15_s7, [#allocation3]  }
  0x11   :  { %320 = dma.done.wait [#allocation3], 64  }
  0x12   :  { %321 = vsyncadd [#allocation3], 4294967232  ;;  %v23_v0 = vlaneseq  ;;  %v325_v1 = vmov 1966171168   ;;  %v21_v6 = vld [vmem:[#allocation2] sm:$0xf] }
  0x13   :  { %v63_v2 = vunpack.c.l.s4 %v325_v1  ;;  %v279_v7 = vtrunc.f32 %v21_v6  ;;  %vm110_vm0 = vcmask 36864   ;;  %s326_s0 = smov 5   ;;  %s327_s18 = smov 123  }
  0x14   :  { %v26_v3 = vshrl.u32 %v23_v0, 7  ;;  %v24_v27 = vand.u32 127, %v23_v0  ;;  %s310_s23 = scalar_lea.hbm %s388_s1, 16 }
  0x15   :  { %v64_v4 = vunpack.c.0.s8 %v63_v2  ;;  %v280_v12 = vcvt.f32.s32 %v279_v7  ;;  %p311_p8 = scmp.ne.s32.totalorder %s388_s1, %s310_s23  ;;  %p314_p9 = scmp.lt.u32.totalorder %s310_s23, %s388_s1 }
  0x16   :  { %v27_v8 = vsub.s32 0, %v26_v3  ;;  %v43_v9 = vsub.s32 2, %v26_v3  ;;  %v35_v11 = vsub.s32 1, %v26_v3  ;;  %v51_v13 = vsub.s32 3, %v26_v3 }
  0x17   :  { %v67_v5 = vsub.s32 %v64_v4, %v26_v3  ;;  %v165_v44 = vsub.s32 %v24_v27, %v26_v3  ;;  %p316_p10 = pnand %p314_p9, %p311_p8 }
  0x18   :  { %v28_v16 = vrot.slane %v280_v12, %v27_v8  ;;  %v44_v17 = vrot.slane %v280_v12, %v43_v9  ;;  %v36_v21 = vrot.slane %v280_v12, %v35_v11  ;;  %v52_v22 = vrot.slane %v280_v12, %v51_v13 }
  0x19   :  { %v68_v10 = vrot.slane %v21_v6, %v67_v5  ;;  %v126_v40 = vrot.slane %v21_v6, %v27_v8  ;;  %v142_v41 = vrot.slane %v21_v6, %v43_v9  ;;  %v150_v42 = vrot.slane %v21_v6, %v51_v13 }
  0x1a   :  { %31 = vbcast.lane.b32.xlu0 %v28_v16, 261  ;;  %47 = vbcast.lane.b32.xlu1 %v44_v17, 261  ;;  %v134_v43 = vrot.slane %v21_v6, %v35_v11 }
  0x1b   :  { %v76_v14 = vrot.slane %v68_v10, %v67_v5  ;;  %v69_v15 = vcombine.high %v68_v10, %v68_v10 }
  0x1d   :  { %v351_v18 = vrot.slane %v76_v14, %v27_v8  ;;  %v84_v19 = vcombine.high %v76_v14, %v76_v14  ;;  %v83_v20 = vrot.slane %v69_v15, %v67_v5 }
  0x1e   :  { %39 = vbcast.lane.b32.xlu0 %v36_v21, 261  ;;  %55 = vbcast.lane.b32.xlu1 %v52_v22, 261 }
  0x1f   :  { %v353_v23 = vrot.slane %v84_v19, %v27_v8  ;;  %v355_v24 = vrot.slane %v83_v20, %v27_v8  ;;  %v85_v25 = vcombine.high %v83_v20, %v83_v20 }
  0x21   :  { %v357_v26 = vrot.slane %v85_v25, %v27_v8 }
  0x8c   :  { %v32_v28 = vpop.permute.xlu0 %31  ;;  %v48_v29 = vpop.permute.xlu1 %47 }
  0x8d   :  { %vm57_vm1 = vcmp.eq.s32.totalorder %v24_v27, %v32_v28  ;;  %vm59_vm2 = vcmp.eq.s32.totalorder %v24_v27, %v48_v29 }
  0x8e   :  { %v106_v30 = vsel %vm57_vm1, %v351_v18, 0.0  ;;  %v108_v31 = vsel %vm59_vm2, %v353_v23, 0.0 }
  0x8f   :  { %v111_v32 = vsel %vm110_vm0, %v106_v30, 0.0  ;;  %v117_v35 = vsel %vm110_vm0, %v108_v31, 0.0 }
  0x90   :  { %112 = vadd.xlane.f32.xlu0 %v111_v32  ;;  %v40_v33 = vpop.permute.xlu0 %39  ;;  %v56_v34 = vpop.permute.xlu1 %55 }
  0x91   :  { %vm58_vm3 = vcmp.eq.s32.totalorder %v24_v27, %v40_v33  ;;  %vm60_vm4 = vcmp.eq.s32.totalorder %v24_v27, %v56_v34 }
  0x92   :  { %v107_v36 = vsel %vm58_vm3, %v355_v24, 0.0  ;;  %v109_v37 = vsel %vm60_vm4, %v357_v26, 0.0 }
  0x93   :  { %v114_v38 = vsel %vm110_vm0, %v107_v36, 0.0  ;;  %v120_v39 = vsel %vm110_vm0, %v109_v37, 0.0 }
  0x94   :  { %118 = vadd.xlane.f32.xlu0 %v117_v35  ;;  %115 = vadd.xlane.f32.xlu1 %v114_v38 }
  0x98   :  { %121 = vadd.xlane.f32.xlu0 %v120_v39 }
  0xa5   :  { %129 = vbcast.lane.b32.xlu1 %v126_v40, 261 }
  0xa9   :  { %145 = vbcast.lane.b32.xlu1 %v142_v41, 261 }
  0xad   :  { %153 = vbcast.lane.b32.xlu1 %v150_v42, 261 }
  0xae   :  { %137 = vbcast.lane.b32.xlu0 %v134_v43, 261 }
 0x11d   :  { %v113_v45 = vpop.xlane.xlu0 %112 }
 0x11e   :  { %v166_v46 = vrot.slane %v113_v45, %v165_v44 }
 0x120   :  { %v198_v47 = vsub.f32 %v113_v45, %v166_v46 }
 0x121   :  { %v116_v48 = vpop.xlane.xlu1 %115  ;;  %v119_v49 = vpop.xlane.xlu0 %118 }
 0x122   :  { %v170_v50 = vrot.slane %v116_v48, %v165_v44  ;;  %v174_v51 = vrot.slane %v119_v49, %v165_v44  ;;  %210 = vrot.lane.b32.xlu0 %v198_v47, %s326_s0 }
 0x124   :  { %v199_v52 = vsub.f32 %v116_v48, %v170_v50  ;;  %v200_v53 = vsub.f32 %v119_v49, %v174_v51 }
 0x125   :  { %v122_v54 = vpop.xlane.xlu0 %121  ;;  %v130_v57 = vpop.permute.xlu1 %129 }
 0x126   :  { %v178_v55 = vrot.slane %v122_v54, %v165_v44  ;;  %212 = vrot.lane.b32.xlu1 %v199_v52, %s326_s0  ;;  %214 = vrot.lane.b32.xlu0 %v200_v53, %s326_s0  ;;  %v155_v60 = vsub.f32 %v130_v57, %v351_v18 }
 0x128   :  { %v201_v56 = vsub.f32 %v122_v54, %v178_v55  ;;  %v202_v62 = vsub.f32 0.0, %v155_v60 }
 0x129   :  { %v146_v58 = vpop.permute.xlu1 %145  ;;  %v138_v59 = vpop.permute.xlu0 %137 }
 0x12a   :  { %216 = vrot.lane.b32.xlu1 %v201_v56, %s326_s0  ;;  %v157_v63 = vsub.f32 %v146_v58, %v353_v23  ;;  %v156_v0 = vsub.f32 %v138_v59, %v355_v24 }
 0x12c   :  { %v204_v3 = vsub.f32 0.0, %v157_v63  ;;  %v203_v4 = vsub.f32 0.0, %v156_v0 }
 0x12d   :  { %v154_v61 = vpop.permute.xlu1 %153 }
 0x12e   :  { %v158_v5 = vsub.f32 %v154_v61, %v357_v26 }
 0x130   :  { %v205_v11 = vsub.f32 0.0, %v158_v5 }
 0x194   :  { %v211_v1 = vpop.permute.xlu0 %210 }
 0x195   :  { %v222_v2 = vmul.f32 %v211_v1, %v202_v62 }
 0x197   :  { %v226_v6 = vmax.f32 %v222_v2, 0.0 }
 0x198   :  { %v213_v7 = vpop.permute.xlu1 %212  ;;  %v215_v8 = vpop.permute.xlu0 %214 }
 0x199   :  { %v223_v9 = vmul.f32 %v213_v7, %v203_v4  ;;  %v224_v10 = vmul.f32 %v215_v8, %v204_v3  ;;  %234 = vrot.lane.b32.xlu0 %v226_v6, %s327_s18 }
 0x19b   :  { %v227_v12 = vmax.f32 %v223_v9, 0.0  ;;  %v228_v13 = vmax.f32 %v224_v10, 0.0 }
 0x19c   :  { %v217_v14 = vpop.permute.xlu1 %216 }
 0x19d   :  { %v225_v15 = vmul.f32 %v217_v14, %v205_v11  ;;  %236 = vrot.lane.b32.xlu1 %v227_v12, %s327_s18  ;;  %238 = vrot.lane.b32.xlu0 %v228_v13, %s327_s18 }
 0x19f   :  { %v229_v16 = vmax.f32 %v225_v15, 0.0 }
 0x1a1   :  { %240 = vrot.lane.b32.xlu1 %v229_v16, %s327_s18 }
 0x20b   :  { %v235_v17 = vpop.permute.xlu0 %234 }
 0x20c   :  { %v246_v20 = vsel %vm110_vm0, %v235_v17, 0.0 }
 0x20f   :  { %v237_v18 = vpop.permute.xlu1 %236  ;;  %v239_v19 = vpop.permute.xlu0 %238 }
 0x210   :  { %v247_v21 = vsel %vm110_vm0, %v237_v18, 0.0  ;;  %v249_v23 = vsel %vm110_vm0, %v239_v19, 0.0 }
 0x211   :  { %v248_v22 = vadd.f32 %v247_v21, %v246_v20 }
 0x213   :  { %v250_v24 = vadd.f32 %v249_v23, %v248_v22  ;;  %v241_v25 = vpop.permute.xlu1 %240 }
 0x214   :  { %v251_v26 = vsel %vm110_vm0, %v241_v25, 0.0 }
 0x215   :  { %v252_v27 = vadd.f32 %v251_v26, %v250_v24 }
 0x217   :  { %253 = vadd.xlane.f32.xlu0 %v252_v27 }
 0x2a4   :  { %v254_v28 = vpop.xlane.xlu0 %253 }
 0x2a5   :  { %v255_v29 = vrot.slane %v254_v28, 4 }
 0x2a7   :  { %v256_v30 = vadd.f32 %v255_v29, %v254_v28 }
 0x2a9   :  { %v257_v31 = vrot.slane %v256_v30, 2 }
 0x2ab   :  { %v258_v32 = vadd.f32 %v257_v31, %v256_v30 }
 0x2ad   :  { %v259_v33 = vrot.slane %v258_v32, 1 }
 0x2af   :  { %v260_v34 = vadd.f32 %v259_v33, %v258_v32 }
 0x2b1   :  { %281 = vpush %v260_v34 }
 0x2e2   :  { %s282_s19 = spop %281 }
 0x2e3   :  { %s262_s20 = smul.f32 0.125, %s282_s19 }
 0x2e5   :  { %264 = sst [smem:[#allocation5]] %s262_s20 }
 0x2e6   :  { %319 = shalt.err (!%p316_p10)
}
 0x2e7   :  { %s328_s28 = smov [#allocation5]  }
 0x2e8   :  { %272 = dma.smem_to_hbm %s328_s28, 16, %s388_s1, [#allocation4]  }
 0x2e9   :  { %322 = dma.done.wait [#allocation4], 16  }
 0x2ea   :  { %323 = vsyncadd [#allocation4], 4294967280 }
 0x2eb   :  { %276 = sfence }
 0x2ec   :  { %277 = vsyncpa [#allocation3], 1 }
 0x2ed   :  { %278 = vsyncpa [#allocation4], 1 }

</bundles_post_ra>
